<compile_context>
chip_gen: v5e
topology: v5e:2x2
jax: 0.10.0
libtpu: 0.0.40
codegen_flags: <defaults>
</compile_context>

<pallas_src>
import functools

import jax
import jax.numpy as jnp
from jax.experimental import pallas as pl
from jax.experimental.pallas import tpu as pltpu


def _med3(a, b, c):
    """Elementwise median of three (4 min/max ops)."""
    return jnp.maximum(jnp.minimum(a, b), jnp.minimum(jnp.maximum(a, b), c))


def _sort3(a, b, c):
    """Elementwise 3-sort (3 compare-exchanges = 6 min/max ops)."""
    a, b = jnp.minimum(a, b), jnp.maximum(a, b)
    b, c = jnp.minimum(b, c), jnp.maximum(b, c)
    a, b = jnp.minimum(a, b), jnp.maximum(a, b)
    return a, b, c


def _forgetful_median(vals):
    """Median of len(vals) elementwise arrays via forgetful selection.

    Keeps at most (n+3)//2 arrays live (vs n for a full sorting network), which
    keeps vreg/VMEM pressure bounded for k >= 5.
    """
    n = len(vals)

    def drop_min_max(work):
        work = list(work)
        s = len(work)
        for i in range(s - 1):            # bubble one max to the back
            a, b = work[i], work[i + 1]
            work[i], work[i + 1] = jnp.minimum(a, b), jnp.maximum(a, b)
        for i in range(s - 2, 0, -1):     # bubble one min to the front
            a, b = work[i - 1], work[i]
            work[i - 1], work[i] = jnp.minimum(a, b), jnp.maximum(a, b)
        return work[1:-1]                 # discard that min and that max

    m0 = (n + 3) // 2
    work = drop_min_max(vals[:m0])
    for v in vals[m0:]:
        work = drop_min_max(work + [v])
    assert len(work) == 1
    return work[0]


def _make_median_kernel(k: int, tb: int, H: int, W: int):
    """Kernel: k x k median with zero padding over `tb` planes folded along lanes."""
    p = k // 2
    wp = W + 2 * p            # padded width of one plane chunk
    WF = tb * wp              # folded padded width (lane axis of the scratch)
    WO = WF - 2 * p           # folded output width actually computed

    def kernel(x_ref, o_ref, xp):
        dt = x_ref.dtype
        # ---- build the folded, zero-padded slab in VMEM (no host-side pad) ----
        xp[0:p, :] = jnp.zeros((p, WF), dt)                          # top halo rows
        xp[p + H:p + H + p, :] = jnp.zeros((p, WF), dt)              # bottom halo rows
        for b in range(tb):
            c0 = b * wp
            xp[p:p + H, c0:c0 + p] = jnp.zeros((H, p), dt)           # left halo cols
            xp[p:p + H, c0 + p + W:c0 + wp] = jnp.zeros((H, p), dt)  # right halo cols
            xp[p:p + H, c0 + p:c0 + p + W] = x_ref[b]                # plane interior
        xpv = xp[...]                                                # (H + 2p, WF)

        if k == 3:
            # Vertical 3-sort shared across the 3 horizontal taps, then
            # med9 = med3(max of column-mins, med3 of column-mids, min of column-maxs).
            v0 = xpv[0:H, :]
            v1 = xpv[1:H + 1, :]
            v2 = xpv[2:H + 2, :]
            lo, mid, hi = _sort3(v0, v1, v2)                         # (H, WF) each
            lo0, lo1, lo2 = lo[:, 0:WO], lo[:, 1:1 + WO], lo[:, 2:2 + WO]
            hi0, hi1, hi2 = hi[:, 0:WO], hi[:, 1:1 + WO], hi[:, 2:2 + WO]
            md0, md1, md2 = mid[:, 0:WO], mid[:, 1:1 + WO], mid[:, 2:2 + WO]
            max_lo = jnp.maximum(jnp.maximum(lo0, lo1), lo2)
            min_hi = jnp.minimum(jnp.minimum(hi0, hi1), hi2)
            med_md = _med3(md0, md1, md2)
            out_full = _med3(max_lo, med_md, min_hi)                 # (H, WO)
        else:
            # General odd k: forgetful selection over the k*k shifted views.
            vals = [xpv[dy:dy + H, dx:dx + WO]
                    for dy in range(k) for dx in range(k)]
            out_full = _forgetful_median(vals)                       # (H, WO)

        # ---- scatter the valid columns of each folded plane back out ----
        for b in range(tb):
            c0 = b * wp
            o_ref[b] = out_full[:, c0:c0 + W]

    return kernel


# Conservative cross-generation VMEM budget (v7x has only 64 MiB physical).
_VMEM_BUDGET = 24 * 1024 * 1024


def _vmem_estimate(tb, k, H, W, itemsize):
    p = k // 2
    WF = tb * (W + 2 * p)
    io = 2 * 2 * tb * H * W * itemsize                  # in + out, double-buffered
    scratch = (H + 2 * p) * WF * itemsize
    n_live = 8 if k == 3 else (k * k + 3) // 2 + 4      # live intermediates (upper bound)
    return io + scratch + n_live * (H + 2 * p) * WF * itemsize


def _choose_tb(bc, k, H, W, itemsize):
    """Largest divisor of bc whose estimated VMEM footprint fits the budget."""
    best = 1
    for tb in range(1, bc + 1):
        if bc % tb == 0 and _vmem_estimate(tb, k, H, W, itemsize) <= _VMEM_BUDGET:
            best = tb
    return best


@functools.partial(jax.jit, static_argnums=(1,))
def median_blur(img: jax.Array, kernel_size: int) -> jax.Array:
    """Equivalent of kornia.filters.median_blur (zero padding, forced-odd kernel)."""
    k = kernel_size if kernel_size % 2 == 1 else kernel_size - 1
    if k <= 1:
        return img
    p = k // 2
    B, C, H, W = img.shape
    bc = B * C
    x = img.reshape(bc, H, W)

    itemsize = jnp.dtype(img.dtype).itemsize
    tb = _choose_tb(bc, k, H, W, itemsize)
    # TODO(synk): planes too large for the VMEM budget even at tb=1 (e.g. >1080p f32)
    # would need halo row-tiling via manual DMA (pattern P4); not needed here.
    vmem_limit = int(min(max(32 * 1024 * 1024,
                             2 * _vmem_estimate(tb, k, H, W, itemsize)),
                         48 * 1024 * 1024))

    out = pl.pallas_call(
        _make_median_kernel(k, tb, H, W),
        out_shape=jax.ShapeDtypeStruct((bc, H, W), img.dtype),
        grid=(bc // tb,),
        in_specs=[pl.BlockSpec((tb, H, W), lambda i: (i, 0, 0))],
        out_specs=pl.BlockSpec((tb, H, W), lambda i: (i, 0, 0)),
        scratch_shapes=[pltpu.VMEM((H + 2 * p, tb * (W + 2 * p)), img.dtype)],
        compiler_params=pltpu.CompilerParams(
            dimension_semantics=("parallel",),
            vmem_limit_bytes=vmem_limit,
        ),
    )(x)
    return out.reshape(B, C, H, W)


class MedianBlurJAX:
    """Mirror of the PyTorch MedianBlur module (deterministic / eval-mode path)."""

    def __init__(self, kernel_size: int):
        self.kernel = kernel_size
        self.size_min = kernel_size - 7
        self.size_max = kernel_size + 7
        self.training = False  # eval mode -> uses self.kernel deterministically

    def __call__(self, img, *_):
        # TODO(synk): training-mode random kernel-size draw (random.randint) is
        # host-side Python RNG; eval mode (used here) keeps the fixed kernel exact.
        kernel_size = self.kernel
        return median_blur(img, kernel_size)


if __name__ == "__main__":
    key = jax.random.PRNGKey(0)
    x = jax.random.uniform(key, (2, 4, 16, 16), dtype=jnp.float32)

    def ref_median(img, k):
        pd = k // 2
        H, W = img.shape[-2:]
        xp = jnp.pad(img, ((0, 0), (0, 0), (pd, pd), (pd, pd)))
        wins = jnp.stack(
            [xp[:, :, dy:dy + H, dx:dx + W] for dy in range(k) for dx in range(k)],
            axis=2)
        return jnp.median(wins, axis=2)

    ok = True
    # k = 3: exercises the specialized median-of-9 path (module default).
    module = MedianBlurJAX(kernel_size=3)
    y = jax.block_until_ready(module(x))
    ok = ok and (y.shape == x.shape) and (y.dtype == x.dtype)
    ok = ok and bool(jnp.allclose(y, ref_median(x, 3), atol=1e-6))

    # k = 5: exercises the general forgetful-selection path.
    y5 = jax.block_until_ready(median_blur(x, 5))
    ok = ok and bool(jnp.allclose(y5, ref_median(x, 5), atol=1e-6))

    assert ok, "median blur mismatch vs reference"
    print("KERNEL_OK")
</pallas_src>

<mosaic_0001>
module attributes {stable_mosaic.version = 11 : i64} {
  func.func @kernel(%arg0: i32, %arg1: memref<8x16x16xf32, #tpu.memory_space<vmem>>, %arg2: memref<8x16x16xf32, #tpu.memory_space<vmem>>, %arg3: memref<18x144xf32, #tpu.memory_space<vmem>>) attributes {dimension_semantics = [#tpu.dimension_semantics<parallel>], iteration_bounds = array<i64: 1>, scalar_prefetch = 0 : i64, scratch_operands = 1 : i64, tpu.core_type = #tpu.core_type<tc>, window_params = [{transform_indices = @transform_0, window_bounds = array<i64: 8, 16, 16>}, {transform_indices = @transform_1, window_bounds = array<i64: 8, 16, 16>}]} {
    %cst = arith.constant 0.000000e+00 : f32
    %0 = vector.broadcast %cst : f32 to vector<1x144xf32>
    %c0 = arith.constant 0 : index
    %c0_0 = arith.constant 0 : index
    %1 = vector.load %arg3[%c0, %c0_0] : memref<18x144xf32, #tpu.memory_space<vmem>>, vector<1x144xf32>
    tpu.vector_store %arg3[%c0, %c0_0], %0 {strides = array<i32>} : memref<18x144xf32, #tpu.memory_space<vmem>>, vector<1x144xf32>,
    %cst_1 = arith.constant 0.000000e+00 : f32
    %2 = vector.broadcast %cst_1 : f32 to vector<1x144xf32>
    %c17 = arith.constant 17 : index
    %c0_2 = arith.constant 0 : index
    %3 = vector.load %arg3[%c17, %c0_2] : memref<18x144xf32, #tpu.memory_space<vmem>>, vector<1x144xf32>
    tpu.vector_store %arg3[%c17, %c0_2], %2 {strides = array<i32>} : memref<18x144xf32, #tpu.memory_space<vmem>>, vector<1x144xf32>,
    %cst_3 = arith.constant 0.000000e+00 : f32
    %4 = vector.broadcast %cst_3 : f32 to vector<16x1xf32>
    %c1 = arith.constant 1 : index
    %c0_4 = arith.constant 0 : index
    %5 = vector.load %arg3[%c1, %c0_4] : memref<18x144xf32, #tpu.memory_space<vmem>>, vector<16x1xf32>
    tpu.vector_store %arg3[%c1, %c0_4], %4 {strides = array<i32>} : memref<18x144xf32, #tpu.memory_space<vmem>>, vector<16x1xf32>,
    %cst_5 = arith.constant 0.000000e+00 : f32
    %6 = vector.broadcast %cst_5 : f32 to vector<16x1xf32>
    %c1_6 = arith.constant 1 : index
    %c17_7 = arith.constant 17 : index
    %7 = vector.load %arg3[%c1_6, %c17_7] : memref<18x144xf32, #tpu.memory_space<vmem>>, vector<16x1xf32>
    tpu.vector_store %arg3[%c1_6, %c17_7], %6 {strides = array<i32>} : memref<18x144xf32, #tpu.memory_space<vmem>>, vector<16x1xf32>,
    %c0_8 = arith.constant 0 : index
    %c0_9 = arith.constant 0 : index
    %c0_10 = arith.constant 0 : index
    %8 = vector.load %arg1[%c0_8, %c0_9, %c0_10] : memref<8x16x16xf32, #tpu.memory_space<vmem>>, vector<1x16x16xf32>
    %9 = vector.shape_cast %8 : vector<1x16x16xf32> to vector<16x16xf32>
    %c1_11 = arith.constant 1 : index
    %c1_12 = arith.constant 1 : index
    %10 = vector.load %arg3[%c1_11, %c1_12] : memref<18x144xf32, #tpu.memory_space<vmem>>, vector<16x16xf32>
    tpu.vector_store %arg3[%c1_11, %c1_12], %9 {strides = array<i32>} : memref<18x144xf32, #tpu.memory_space<vmem>>, vector<16x16xf32>,
    %cst_13 = arith.constant 0.000000e+00 : f32
    %11 = vector.broadcast %cst_13 : f32 to vector<16x1xf32>
    %c1_14 = arith.constant 1 : index
    %c18 = arith.constant 18 : index
    %12 = vector.load %arg3[%c1_14, %c18] : memref<18x144xf32, #tpu.memory_space<vmem>>, vector<16x1xf32>
    tpu.vector_store %arg3[%c1_14, %c18], %11 {strides = array<i32>} : memref<18x144xf32, #tpu.memory_space<vmem>>, vector<16x1xf32>,
    %cst_15 = arith.constant 0.000000e+00 : f32
    %13 = vector.broadcast %cst_15 : f32 to vector<16x1xf32>
    %c1_16 = arith.constant 1 : index
    %c35 = arith.constant 35 : index
    %14 = vector.load %arg3[%c1_16, %c35] : memref<18x144xf32, #tpu.memory_space<vmem>>, vector<16x1xf32>
    tpu.vector_store %arg3[%c1_16, %c35], %13 {strides = array<i32>} : memref<18x144xf32, #tpu.memory_space<vmem>>, vector<16x1xf32>,
    %c1_17 = arith.constant 1 : index
    %c0_18 = arith.constant 0 : index
    %c0_19 = arith.constant 0 : index
    %15 = vector.load %arg1[%c1_17, %c0_18, %c0_19] : memref<8x16x16xf32, #tpu.memory_space<vmem>>, vector<1x16x16xf32>
    %16 = vector.shape_cast %15 : vector<1x16x16xf32> to vector<16x16xf32>
    %c1_20 = arith.constant 1 : index
    %c19 = arith.constant 19 : index
    %17 = vector.load %arg3[%c1_20, %c19] : memref<18x144xf32, #tpu.memory_space<vmem>>, vector<16x16xf32>
    tpu.vector_store %arg3[%c1_20, %c19], %16 {strides = array<i32>} : memref<18x144xf32, #tpu.memory_space<vmem>>, vector<16x16xf32>,
    %cst_21 = arith.constant 0.000000e+00 : f32
    %18 = vector.broadcast %cst_21 : f32 to vector<16x1xf32>
    %c1_22 = arith.constant 1 : index
    %c36 = arith.constant 36 : index
    %19 = vector.load %arg3[%c1_22, %c36] : memref<18x144xf32, #tpu.memory_space<vmem>>, vector<16x1xf32>
    tpu.vector_store %arg3[%c1_22, %c36], %18 {strides = array<i32>} : memref<18x144xf32, #tpu.memory_space<vmem>>, vector<16x1xf32>,
    %cst_23 = arith.constant 0.000000e+00 : f32
    %20 = vector.broadcast %cst_23 : f32 to vector<16x1xf32>
    %c1_24 = arith.constant 1 : index
    %c53 = arith.constant 53 : index
    %21 = vector.load %arg3[%c1_24, %c53] : memref<18x144xf32, #tpu.memory_space<vmem>>, vector<16x1xf32>
    tpu.vector_store %arg3[%c1_24, %c53], %20 {strides = array<i32>} : memref<18x144xf32, #tpu.memory_space<vmem>>, vector<16x1xf32>,
    %c2 = arith.constant 2 : index
    %c0_25 = arith.constant 0 : index
    %c0_26 = arith.constant 0 : index
    %22 = vector.load %arg1[%c2, %c0_25, %c0_26] : memref<8x16x16xf32, #tpu.memory_space<vmem>>, vector<1x16x16xf32>
    %23 = vector.shape_cast %22 : vector<1x16x16xf32> to vector<16x16xf32>
    %c1_27 = arith.constant 1 : index
    %c37 = arith.constant 37 : index
    %24 = vector.load %arg3[%c1_27, %c37] : memref<18x144xf32, #tpu.memory_space<vmem>>, vector<16x16xf32>
    tpu.vector_store %arg3[%c1_27, %c37], %23 {strides = array<i32>} : memref<18x144xf32, #tpu.memory_space<vmem>>, vector<16x16xf32>,
    %cst_28 = arith.constant 0.000000e+00 : f32
    %25 = vector.broadcast %cst_28 : f32 to vector<16x1xf32>
    %c1_29 = arith.constant 1 : index
    %c54 = arith.constant 54 : index
    %26 = vector.load %arg3[%c1_29, %c54] : memref<18x144xf32, #tpu.memory_space<vmem>>, vector<16x1xf32>
    tpu.vector_store %arg3[%c1_29, %c54], %25 {strides = array<i32>} : memref<18x144xf32, #tpu.memory_space<vmem>>, vector<16x1xf32>,
    %cst_30 = arith.constant 0.000000e+00 : f32
    %27 = vector.broadcast %cst_30 : f32 to vector<16x1xf32>
    %c1_31 = arith.constant 1 : index
    %c71 = arith.constant 71 : index
    %28 = vector.load %arg3[%c1_31, %c71] : memref<18x144xf32, #tpu.memory_space<vmem>>, vector<16x1xf32>
    tpu.vector_store %arg3[%c1_31, %c71], %27 {strides = array<i32>} : memref<18x144xf32, #tpu.memory_space<vmem>>, vector<16x1xf32>,
    %c3 = arith.constant 3 : index
    %c0_32 = arith.constant 0 : index
    %c0_33 = arith.constant 0 : index
    %29 = vector.load %arg1[%c3, %c0_32, %c0_33] : memref<8x16x16xf32, #tpu.memory_space<vmem>>, vector<1x16x16xf32>
    %30 = vector.shape_cast %29 : vector<1x16x16xf32> to vector<16x16xf32>
    %c1_34 = arith.constant 1 : index
    %c55 = arith.constant 55 : index
    %31 = vector.load %arg3[%c1_34, %c55] : memref<18x144xf32, #tpu.memory_space<vmem>>, vector<16x16xf32>
    tpu.vector_store %arg3[%c1_34, %c55], %30 {strides = array<i32>} : memref<18x144xf32, #tpu.memory_space<vmem>>, vector<16x16xf32>,
    %cst_35 = arith.constant 0.000000e+00 : f32
    %32 = vector.broadcast %cst_35 : f32 to vector<16x1xf32>
    %c1_36 = arith.constant 1 : index
    %c72 = arith.constant 72 : index
    %33 = vector.load %arg3[%c1_36, %c72] : memref<18x144xf32, #tpu.memory_space<vmem>>, vector<16x1xf32>
    tpu.vector_store %arg3[%c1_36, %c72], %32 {strides = array<i32>} : memref<18x144xf32, #tpu.memory_space<vmem>>, vector<16x1xf32>,
    %cst_37 = arith.constant 0.000000e+00 : f32
    %34 = vector.broadcast %cst_37 : f32 to vector<16x1xf32>
    %c1_38 = arith.constant 1 : index
    %c89 = arith.constant 89 : index
    %35 = vector.load %arg3[%c1_38, %c89] : memref<18x144xf32, #tpu.memory_space<vmem>>, vector<16x1xf32>
    tpu.vector_store %arg3[%c1_38, %c89], %34 {strides = array<i32>} : memref<18x144xf32, #tpu.memory_space<vmem>>, vector<16x1xf32>,
    %c4 = arith.constant 4 : index
    %c0_39 = arith.constant 0 : index
    %c0_40 = arith.constant 0 : index
    %36 = vector.load %arg1[%c4, %c0_39, %c0_40] : memref<8x16x16xf32, #tpu.memory_space<vmem>>, vector<1x16x16xf32>
    %37 = vector.shape_cast %36 : vector<1x16x16xf32> to vector<16x16xf32>
    %c1_41 = arith.constant 1 : index
    %c73 = arith.constant 73 : index
    %38 = vector.load %arg3[%c1_41, %c73] : memref<18x144xf32, #tpu.memory_space<vmem>>, vector<16x16xf32>
    tpu.vector_store %arg3[%c1_41, %c73], %37 {strides = array<i32>} : memref<18x144xf32, #tpu.memory_space<vmem>>, vector<16x16xf32>,
    %cst_42 = arith.constant 0.000000e+00 : f32
    %39 = vector.broadcast %cst_42 : f32 to vector<16x1xf32>
    %c1_43 = arith.constant 1 : index
    %c90 = arith.constant 90 : index
    %40 = vector.load %arg3[%c1_43, %c90] : memref<18x144xf32, #tpu.memory_space<vmem>>, vector<16x1xf32>
    tpu.vector_store %arg3[%c1_43, %c90], %39 {strides = array<i32>} : memref<18x144xf32, #tpu.memory_space<vmem>>, vector<16x1xf32>,
    %cst_44 = arith.constant 0.000000e+00 : f32
    %41 = vector.broadcast %cst_44 : f32 to vector<16x1xf32>
    %c1_45 = arith.constant 1 : index
    %c107 = arith.constant 107 : index
    %42 = vector.load %arg3[%c1_45, %c107] : memref<18x144xf32, #tpu.memory_space<vmem>>, vector<16x1xf32>
    tpu.vector_store %arg3[%c1_45, %c107], %41 {strides = array<i32>} : memref<18x144xf32, #tpu.memory_space<vmem>>, vector<16x1xf32>,
    %c5 = arith.constant 5 : index
    %c0_46 = arith.constant 0 : index
    %c0_47 = arith.constant 0 : index
    %43 = vector.load %arg1[%c5, %c0_46, %c0_47] : memref<8x16x16xf32, #tpu.memory_space<vmem>>, vector<1x16x16xf32>
    %44 = vector.shape_cast %43 : vector<1x16x16xf32> to vector<16x16xf32>
    %c1_48 = arith.constant 1 : index
    %c91 = arith.constant 91 : index
    %45 = vector.load %arg3[%c1_48, %c91] : memref<18x144xf32, #tpu.memory_space<vmem>>, vector<16x16xf32>
    tpu.vector_store %arg3[%c1_48, %c91], %44 {strides = array<i32>} : memref<18x144xf32, #tpu.memory_space<vmem>>, vector<16x16xf32>,
    %cst_49 = arith.constant 0.000000e+00 : f32
    %46 = vector.broadcast %cst_49 : f32 to vector<16x1xf32>
    %c1_50 = arith.constant 1 : index
    %c108 = arith.constant 108 : index
    %47 = vector.load %arg3[%c1_50, %c108] : memref<18x144xf32, #tpu.memory_space<vmem>>, vector<16x1xf32>
    tpu.vector_store %arg3[%c1_50, %c108], %46 {strides = array<i32>} : memref<18x144xf32, #tpu.memory_space<vmem>>, vector<16x1xf32>,
    %cst_51 = arith.constant 0.000000e+00 : f32
    %48 = vector.broadcast %cst_51 : f32 to vector<16x1xf32>
    %c1_52 = arith.constant 1 : index
    %c125 = arith.constant 125 : index
    %49 = vector.load %arg3[%c1_52, %c125] : memref<18x144xf32, #tpu.memory_space<vmem>>, vector<16x1xf32>
    tpu.vector_store %arg3[%c1_52, %c125], %48 {strides = array<i32>} : memref<18x144xf32, #tpu.memory_space<vmem>>, vector<16x1xf32>,
    %c6 = arith.constant 6 : index
    %c0_53 = arith.constant 0 : index
    %c0_54 = arith.constant 0 : index
    %50 = vector.load %arg1[%c6, %c0_53, %c0_54] : memref<8x16x16xf32, #tpu.memory_space<vmem>>, vector<1x16x16xf32>
    %51 = vector.shape_cast %50 : vector<1x16x16xf32> to vector<16x16xf32>
    %c1_55 = arith.constant 1 : index
    %c109 = arith.constant 109 : index
    %52 = vector.load %arg3[%c1_55, %c109] : memref<18x144xf32, #tpu.memory_space<vmem>>, vector<16x16xf32>
    tpu.vector_store %arg3[%c1_55, %c109], %51 {strides = array<i32>} : memref<18x144xf32, #tpu.memory_space<vmem>>, vector<16x16xf32>,
    %cst_56 = arith.constant 0.000000e+00 : f32
    %53 = vector.broadcast %cst_56 : f32 to vector<16x1xf32>
    %c1_57 = arith.constant 1 : index
    %c126 = arith.constant 126 : index
    %54 = vector.load %arg3[%c1_57, %c126] : memref<18x144xf32, #tpu.memory_space<vmem>>, vector<16x1xf32>
    tpu.vector_store %arg3[%c1_57, %c126], %53 {strides = array<i32>} : memref<18x144xf32, #tpu.memory_space<vmem>>, vector<16x1xf32>,
    %cst_58 = arith.constant 0.000000e+00 : f32
    %55 = vector.broadcast %cst_58 : f32 to vector<16x1xf32>
    %c1_59 = arith.constant 1 : index
    %c143 = arith.constant 143 : index
    %56 = vector.load %arg3[%c1_59, %c143] : memref<18x144xf32, #tpu.memory_space<vmem>>, vector<16x1xf32>
    tpu.vector_store %arg3[%c1_59, %c143], %55 {strides = array<i32>} : memref<18x144xf32, #tpu.memory_space<vmem>>, vector<16x1xf32>,
    %c7 = arith.constant 7 : index
    %c0_60 = arith.constant 0 : index
    %c0_61 = arith.constant 0 : index
    %57 = vector.load %arg1[%c7, %c0_60, %c0_61] : memref<8x16x16xf32, #tpu.memory_space<vmem>>, vector<1x16x16xf32>
    %58 = vector.shape_cast %57 : vector<1x16x16xf32> to vector<16x16xf32>
    %c1_62 = arith.constant 1 : index
    %c127 = arith.constant 127 : index
    %59 = vector.load %arg3[%c1_62, %c127] : memref<18x144xf32, #tpu.memory_space<vmem>>, vector<16x16xf32>
    tpu.vector_store %arg3[%c1_62, %c127], %58 {strides = array<i32>} : memref<18x144xf32, #tpu.memory_space<vmem>>, vector<16x16xf32>,
    %c0_63 = arith.constant 0 : index
    %c0_64 = arith.constant 0 : index
    %60 = vector.load %arg3[%c0_63, %c0_64] : memref<18x144xf32, #tpu.memory_space<vmem>>, vector<18x144xf32>
    %61 = vector.extract_strided_slice %60 {offsets = [0, 0], sizes = [16, 144], strides = [1, 1]} : vector<18x144xf32> to vector<16x144xf32>
    %62 = vector.extract_strided_slice %60 {offsets = [1, 0], sizes = [16, 144], strides = [1, 1]} : vector<18x144xf32> to vector<16x144xf32>
    %63 = vector.extract_strided_slice %60 {offsets = [2, 0], sizes = [16, 144], strides = [1, 1]} : vector<18x144xf32> to vector<16x144xf32>
    %64 = arith.minimumf %61, %62 : vector<16x144xf32>
    %65 = arith.maximumf %61, %62 : vector<16x144xf32>
    %66 = arith.minimumf %65, %63 : vector<16x144xf32>
    %67 = arith.maximumf %65, %63 : vector<16x144xf32>
    %68 = arith.minimumf %64, %66 : vector<16x144xf32>
    %69 = arith.maximumf %64, %66 : vector<16x144xf32>
    %70 = vector.extract_strided_slice %68 {offsets = [0, 0], sizes = [16, 142], strides = [1, 1]} : vector<16x144xf32> to vector<16x142xf32>
    %71 = vector.extract_strided_slice %68 {offsets = [0, 1], sizes = [16, 142], strides = [1, 1]} : vector<16x144xf32> to vector<16x142xf32>
    %72 = vector.extract_strided_slice %68 {offsets = [0, 2], sizes = [16, 142], strides = [1, 1]} : vector<16x144xf32> to vector<16x142xf32>
    %73 = vector.extract_strided_slice %67 {offsets = [0, 0], sizes = [16, 142], strides = [1, 1]} : vector<16x144xf32> to vector<16x142xf32>
    %74 = vector.extract_strided_slice %67 {offsets = [0, 1], sizes = [16, 142], strides = [1, 1]} : vector<16x144xf32> to vector<16x142xf32>
    %75 = vector.extract_strided_slice %67 {offsets = [0, 2], sizes = [16, 142], strides = [1, 1]} : vector<16x144xf32> to vector<16x142xf32>
    %76 = vector.extract_strided_slice %69 {offsets = [0, 0], sizes = [16, 142], strides = [1, 1]} : vector<16x144xf32> to vector<16x142xf32>
    %77 = vector.extract_strided_slice %69 {offsets = [0, 1], sizes = [16, 142], strides = [1, 1]} : vector<16x144xf32> to vector<16x142xf32>
    %78 = vector.extract_strided_slice %69 {offsets = [0, 2], sizes = [16, 142], strides = [1, 1]} : vector<16x144xf32> to vector<16x142xf32>
    %79 = arith.maximumf %70, %71 : vector<16x142xf32>
    %80 = arith.maximumf %79, %72 : vector<16x142xf32>
    %81 = arith.minimumf %73, %74 : vector<16x142xf32>
    %82 = arith.minimumf %81, %75 : vector<16x142xf32>
    %83 = arith.minimumf %76, %77 : vector<16x142xf32>
    %84 = arith.maximumf %76, %77 : vector<16x142xf32>
    %85 = arith.minimumf %84, %78 : vector<16x142xf32>
    %86 = arith.maximumf %83, %85 : vector<16x142xf32>
    %87 = arith.minimumf %80, %86 : vector<16x142xf32>
    %88 = arith.maximumf %80, %86 : vector<16x142xf32>
    %89 = arith.minimumf %88, %82 : vector<16x142xf32>
    %90 = arith.maximumf %87, %89 : vector<16x142xf32>
    %91 = vector.extract_strided_slice %90 {offsets = [0, 0], sizes = [16, 16], strides = [1, 1]} : vector<16x142xf32> to vector<16x16xf32>
    %c0_65 = arith.constant 0 : index
    %c0_66 = arith.constant 0 : index
    %c0_67 = arith.constant 0 : index
    %92 = vector.load %arg2[%c0_65, %c0_66, %c0_67] : memref<8x16x16xf32, #tpu.memory_space<vmem>>, vector<1x16x16xf32>
    %93 = vector.shape_cast %92 : vector<1x16x16xf32> to vector<16x16xf32>
    %94 = vector.shape_cast %91 : vector<16x16xf32> to vector<1x16x16xf32>
    tpu.vector_store %arg2[%c0_65, %c0_66, %c0_67], %94 {strides = array<i32>} : memref<8x16x16xf32, #tpu.memory_space<vmem>>, vector<1x16x16xf32>,
    %95 = vector.extract_strided_slice %90 {offsets = [0, 18], sizes = [16, 16], strides = [1, 1]} : vector<16x142xf32> to vector<16x16xf32>
    %c1_68 = arith.constant 1 : index
    %c0_69 = arith.constant 0 : index
    %c0_70 = arith.constant 0 : index
    %96 = vector.load %arg2[%c1_68, %c0_69, %c0_70] : memref<8x16x16xf32, #tpu.memory_space<vmem>>, vector<1x16x16xf32>
    %97 = vector.shape_cast %96 : vector<1x16x16xf32> to vector<16x16xf32>
    %98 = vector.shape_cast %95 : vector<16x16xf32> to vector<1x16x16xf32>
    tpu.vector_store %arg2[%c1_68, %c0_69, %c0_70], %98 {strides = array<i32>} : memref<8x16x16xf32, #tpu.memory_space<vmem>>, vector<1x16x16xf32>,
    %99 = vector.extract_strided_slice %90 {offsets = [0, 36], sizes = [16, 16], strides = [1, 1]} : vector<16x142xf32> to vector<16x16xf32>
    %c2_71 = arith.constant 2 : index
    %c0_72 = arith.constant 0 : index
    %c0_73 = arith.constant 0 : index
    %100 = vector.load %arg2[%c2_71, %c0_72, %c0_73] : memref<8x16x16xf32, #tpu.memory_space<vmem>>, vector<1x16x16xf32>
    %101 = vector.shape_cast %100 : vector<1x16x16xf32> to vector<16x16xf32>
    %102 = vector.shape_cast %99 : vector<16x16xf32> to vector<1x16x16xf32>
    tpu.vector_store %arg2[%c2_71, %c0_72, %c0_73], %102 {strides = array<i32>} : memref<8x16x16xf32, #tpu.memory_space<vmem>>, vector<1x16x16xf32>,
    %103 = vector.extract_strided_slice %90 {offsets = [0, 54], sizes = [16, 16], strides = [1, 1]} : vector<16x142xf32> to vector<16x16xf32>
    %c3_74 = arith.constant 3 : index
    %c0_75 = arith.constant 0 : index
    %c0_76 = arith.constant 0 : index
    %104 = vector.load %arg2[%c3_74, %c0_75, %c0_76] : memref<8x16x16xf32, #tpu.memory_space<vmem>>, vector<1x16x16xf32>
    %105 = vector.shape_cast %104 : vector<1x16x16xf32> to vector<16x16xf32>
    %106 = vector.shape_cast %103 : vector<16x16xf32> to vector<1x16x16xf32>
    tpu.vector_store %arg2[%c3_74, %c0_75, %c0_76], %106 {strides = array<i32>} : memref<8x16x16xf32, #tpu.memory_space<vmem>>, vector<1x16x16xf32>,
    %107 = vector.extract_strided_slice %90 {offsets = [0, 72], sizes = [16, 16], strides = [1, 1]} : vector<16x142xf32> to vector<16x16xf32>
    %c4_77 = arith.constant 4 : index
    %c0_78 = arith.constant 0 : index
    %c0_79 = arith.constant 0 : index
    %108 = vector.load %arg2[%c4_77, %c0_78, %c0_79] : memref<8x16x16xf32, #tpu.memory_space<vmem>>, vector<1x16x16xf32>
    %109 = vector.shape_cast %108 : vector<1x16x16xf32> to vector<16x16xf32>
    %110 = vector.shape_cast %107 : vector<16x16xf32> to vector<1x16x16xf32>
    tpu.vector_store %arg2[%c4_77, %c0_78, %c0_79], %110 {strides = array<i32>} : memref<8x16x16xf32, #tpu.memory_space<vmem>>, vector<1x16x16xf32>,
    %111 = vector.extract_strided_slice %90 {offsets = [0, 90], sizes = [16, 16], strides = [1, 1]} : vector<16x142xf32> to vector<16x16xf32>
    %c5_80 = arith.constant 5 : index
    %c0_81 = arith.constant 0 : index
    %c0_82 = arith.constant 0 : index
    %112 = vector.load %arg2[%c5_80, %c0_81, %c0_82] : memref<8x16x16xf32, #tpu.memory_space<vmem>>, vector<1x16x16xf32>
    %113 = vector.shape_cast %112 : vector<1x16x16xf32> to vector<16x16xf32>
    %114 = vector.shape_cast %111 : vector<16x16xf32> to vector<1x16x16xf32>
    tpu.vector_store %arg2[%c5_80, %c0_81, %c0_82], %114 {strides = array<i32>} : memref<8x16x16xf32, #tpu.memory_space<vmem>>, vector<1x16x16xf32>,
    %115 = vector.extract_strided_slice %90 {offsets = [0, 108], sizes = [16, 16], strides = [1, 1]} : vector<16x142xf32> to vector<16x16xf32>
    %c6_83 = arith.constant 6 : index
    %c0_84 = arith.constant 0 : index
    %c0_85 = arith.constant 0 : index
    %116 = vector.load %arg2[%c6_83, %c0_84, %c0_85] : memref<8x16x16xf32, #tpu.memory_space<vmem>>, vector<1x16x16xf32>
    %117 = vector.shape_cast %116 : vector<1x16x16xf32> to vector<16x16xf32>
    %118 = vector.shape_cast %115 : vector<16x16xf32> to vector<1x16x16xf32>
    tpu.vector_store %arg2[%c6_83, %c0_84, %c0_85], %118 {strides = array<i32>} : memref<8x16x16xf32, #tpu.memory_space<vmem>>, vector<1x16x16xf32>,
    %119 = vector.extract_strided_slice %90 {offsets = [0, 126], sizes = [16, 16], strides = [1, 1]} : vector<16x142xf32> to vector<16x16xf32>
    %c7_86 = arith.constant 7 : index
    %c0_87 = arith.constant 0 : index
    %c0_88 = arith.constant 0 : index
    %120 = vector.load %arg2[%c7_86, %c0_87, %c0_88] : memref<8x16x16xf32, #tpu.memory_space<vmem>>, vector<1x16x16xf32>
    %121 = vector.shape_cast %120 : vector<1x16x16xf32> to vector<16x16xf32>
    %122 = vector.shape_cast %119 : vector<16x16xf32> to vector<1x16x16xf32>
    tpu.vector_store %arg2[%c7_86, %c0_87, %c0_88], %122 {strides = array<i32>} : memref<8x16x16xf32, #tpu.memory_space<vmem>>, vector<1x16x16xf32>,
    return
  }
  func.func @transform_0(%arg0: i32) -> (i32, i32, i32) {
    %c0_i32 = arith.constant 0 : i32
    %c0_i32_0 = arith.constant 0 : i32
    %c0_i32_1 = arith.constant 0 : i32
    return %arg0, %c0_i32, %c0_i32_0 : i32, i32, i32
  }
  func.func @transform_1(%arg0: i32) -> (i32, i32, i32) {
    %c0_i32 = arith.constant 0 : i32
    %c0_i32_0 = arith.constant 0 : i32
    %c0_i32_1 = arith.constant 0 : i32
    return %arg0, %c0_i32, %c0_i32_0 : i32, i32, i32
  }
}

</mosaic_0001>

<bundles_post_ra>
// kernel: median_blur.1
= control target key start
LH: loop header
LB: loop body
LE: loop exit
PB: predicated region body
PF: predicated region fallthrough
CT: control target
= control target key end

     0   :  { %6 = vsyncpa [#allocation4], 0  ;;  %s946_s0 = inlined_call_operand.hbm [shape: f32[8,16,16], index: 0, kind: input, shape index: {}]   ;;  %s947_s1 = inlined_call_operand.hbm [shape: f32[8,16,16], index: 1, kind: output, shape index: {}]  }
   0x1   :  { %7 = vsyncpa [#allocation5], 0  ;;  %s12_s8 = sshll.u32 %s946_s0, 4  ;;  %s701_s9 = smov [#allocation3]   ;;  %s13_s8 = int_to_ptr.hbm [resolvable:$true] %s12_s8 }
   0x2   :  { %s14_s10 = sshll.u32 %s701_s9, 4  ;;  %s702_s11 = smov 128   ;;  %s15_s10 = int_to_ptr.vmem [resolvable:$true] %s14_s10 }
   0x3   :  { %s703_s12 = smov 8  }
   0x4   :  { %20 = dma.hbm_to_vmem [thread:$0]  %s13_s8, 2048, %s15_s10, [#allocation4], %s702_s11, %s702_s11, %s703_s12  }
   0x5   :  { %697 = dma.done.wait [#allocation4], 2048  }
   0x6   :  { %698 = vsyncadd [#allocation4], 4294965248  ;;  %v47_v0 = vld [vmem:[#allocation3 + $0x8] sm:$0xff]  ;;  %v46_v1 = vld [vmem:[#allocation3] sm:$0xff]  ;;  %s704_s13 = smov 1   ;;  %s705_s0 = smov 19  }
   0x7   :  { %v52_v2 = vrot.slane %v47_v0, 7  ;;  %v51_v3 = vrot.slane %v46_v1, 7  ;;  %v83_v4 = vld [vmem:[#allocation3 + $0x18] sm:$0xff]  ;;  %v82_v6 = vld [vmem:[#allocation3 + $0x10] sm:$0xff]  ;;  %vm50_vm0 = vcmask 1040384   ;;  %v117_v9 = vld [vmem:[#allocation3 + $0x20] sm:$0xff]  ;;  %v25_v0 = vlaneseq }
   0x8   :  { %v87_v5 = vrot.slane %v83_v4, 7  ;;  %v86_v7 = vrot.slane %v82_v6, 7  ;;  %v118_v10 = vld [vmem:[#allocation3 + $0x28] sm:$0xff]  ;;  %v121_v12 = vrot.slane %v117_v9, 7  ;;  %v152_v15 = vld [vmem:[#allocation3 + $0x30] sm:$0xff]  ;;  %v153_v16 = vld [vmem:[#allocation3 + $0x38] sm:$0xff] }
   0x9   :  { %58 = vrot.lane.b32.xlu1 %v52_v2, %s704_s13  ;;  %54 = vrot.lane.b32.xlu0 %v51_v3, %s704_s13  ;;  %v53_v8 = vsel %vm50_vm0, %v51_v3, %v52_v2  ;;  %v122_v13 = vrot.slane %v118_v10, 7  ;;  %s706_s14 = smov 37   ;;  %v156_v17 = vrot.slane %v152_v15, 7  ;;  %v157_v18 = vrot.slane %v153_v16, 7  ;;  %v187_v20 = vld [vmem:[#allocation3 + $0x40] sm:$0xff]  ;;  %v188_v21 = vld [vmem:[#allocation3 + $0x48] sm:$0xff] }
   0xa   :  { %93 = vrot.lane.b32.xlu2 %v87_v5, %s705_s0  ;;  %v88_v11 = vsel %vm50_vm0, %v86_v7, %v87_v5  ;;  %s707_s15 = smov 55   ;;  %v191_v22 = vrot.slane %v187_v20, 7  ;;  %v192_v23 = vrot.slane %v188_v21, 7  ;;  %v222_v25 = vld [vmem:[#allocation3 + $0x50] sm:$0xff]  ;;  %v223_v26 = vld [vmem:[#allocation3 + $0x58] sm:$0xff]  ;;  %s708_s16 = smov 73  }
   0xb   :  { %v123_v14 = vsel %vm50_vm0, %v121_v12, %v122_v13  ;;  %v158_v19 = vsel %vm50_vm0, %v156_v17, %v157_v18  ;;  %v226_v27 = vrot.slane %v222_v25, 7  ;;  %v227_v28 = vrot.slane %v223_v26, 7  ;;  %v257_v30 = vld [vmem:[#allocation3 + $0x60] sm:$0xff]  ;;  %v258_v31 = vld [vmem:[#allocation3 + $0x68] sm:$0xff]  ;;  %s709_s17 = smov 91   ;;  %v292_v35 = vld [vmem:[#allocation3 + $0x70] sm:$0xff] }
   0xc   :  { %v193_v24 = vsel %vm50_vm0, %v191_v22, %v192_v23  ;;  %v261_v32 = vrot.slane %v257_v30, 7  ;;  %v262_v33 = vrot.slane %v258_v31, 7  ;;  %v293_v36 = vld [vmem:[#allocation3 + $0x78] sm:$0xff]  ;;  %s710_s18 = smov 109   ;;  %v296_v37 = vrot.slane %v292_v35, 7  ;;  %s711_s19 = smov 127  }
   0xd   :  { %v228_v29 = vsel %vm50_vm0, %v226_v27, %v227_v28  ;;  %v297_v38 = vrot.slane %v293_v36, 7  ;;  %vm38_vm1 = vcmask 0   ;;  %vm44_vm2 = vcmask 139400   ;;  %s713_s20 = smov 126   ;;  %s714_s21 = smov 2  }
   0xe   :  { %v263_v34 = vsel %vm50_vm0, %v261_v32, %v262_v33  ;;  %v712_v40 = vmov 0.0   ;;  %vm34_vm3 = vcmask 7169   ;;  %vm40_vm4 = vcmask 146569   ;;  %s715_s22 = smov 92   ;;  %s716_s23 = smov 110  }
   0xf   :  { %v298_v39 = vsel %vm50_vm0, %v296_v37, %v297_v38  ;;  %39 = vst.msk [vmem:[#allocation2 + $0x20] sm:$0x1] %vm38_vm1, %v712_v40  ;;  %vm36_vm5 = vcmask 7168   ;;  %vm42_vm6 = vcmask 146568   ;;  %vm67_vm7 = vcmask 131080   ;;  %s717_s24 = smov 74  }
  0x10   :  { %45 = vst.msk [vmem:[#allocation2 + $0x20] sm:$0x1] %vm44_vm2, %v712_v40  ;;  %vm73_vm8 = vcmask 147600   ;;  %vm79_vm9 = vcmask 287000   ;;  %vm63_vm10 = vcmask 138249   ;;  %vm69_vm11 = vcmask 154769  }
  0x11   :  { %89 = vrot.lane.b32.xlu1 %v86_v7, %s705_s0  ;;  %56 = vrot.lane.b32.xlu0 %v53_v8, %s704_s13  ;;  %35 = vst.msk [vmem:[#allocation2] sm:$0xfe] %vm34_vm3, %v712_v40  ;;  %vm75_vm12 = vcmask 294169   ;;  %vm102_vm13 = vcmask 278680   ;;  %vm108_vm14 = vcmask 295200   ;;  %vm98_vm15 = vcmask 285849  }
  0x12   :  { %91 = vrot.lane.b32.xlu2 %v88_v11, %s705_s0  ;;  %41 = vst.msk [vmem:[#allocation2] sm:$0xfe] %vm40_vm4, %v712_v40  ;;  %vm104_vm0 = vcmask 302369   ;;  %vm65_vm1 = vcmask 138248   ;;  %vm71_vm2 = vcmask 154768   ;;  %vm77_vm3 = vcmask 294168  }
  0x13   :  { %37 = vst.msk [vmem:[#allocation2 + $0x10] sm:$0xff] %vm36_vm5, %v712_v40  ;;  %vm114_vm4 = vcmask 434600   ;;  %vm137_vm5 = vcmask 426280   ;;  %s718_s25 = smov 56   ;;  %s719_s26 = smov 38  }
  0x14   :  { %43 = vst.msk [vmem:[#allocation2 + $0x10] sm:$0xff] %vm42_vm6, %v712_v40  ;;  %vm143_vm6 = vcmask 442800   ;;  %s720_s27 = smov 20   ;;  %s721_s28 = smov [#allocation6]  }
  0x15   :  { %s613_s29 = sshll.u32 %s721_s28, 4  ;;  %s615_s3 = sshll.u32 %s947_s1, 4  ;;  %s614_s29 = int_to_ptr.vmem [resolvable:$true] %s613_s29  ;;  %s616_s3 = int_to_ptr.hbm [resolvable:$true] %s615_s3 }
  0x19   :  { %126 = vrot.lane.b32.xlu1 %v123_v14, %s706_s14  ;;  %124 = vrot.lane.b32.xlu0 %v121_v12, %s706_s14 }
  0x1a   :  { %128 = vrot.lane.b32.xlu2 %v122_v13, %s706_s14 }
  0x21   :  { %161 = vrot.lane.b32.xlu1 %v158_v19, %s707_s15  ;;  %159 = vrot.lane.b32.xlu0 %v156_v17, %s707_s15 }
  0x22   :  { %163 = vrot.lane.b32.xlu2 %v157_v18, %s707_s15 }
  0x29   :  { %196 = vrot.lane.b32.xlu1 %v193_v24, %s708_s16  ;;  %194 = vrot.lane.b32.xlu0 %v191_v22, %s708_s16 }
  0x2a   :  { %198 = vrot.lane.b32.xlu2 %v192_v23, %s708_s16 }
  0x31   :  { %231 = vrot.lane.b32.xlu1 %v228_v29, %s709_s17  ;;  %229 = vrot.lane.b32.xlu0 %v226_v27, %s709_s17 }
  0x32   :  { %233 = vrot.lane.b32.xlu2 %v227_v28, %s709_s17 }
  0x39   :  { %266 = vrot.lane.b32.xlu1 %v263_v34, %s710_s18  ;;  %264 = vrot.lane.b32.xlu0 %v261_v32, %s710_s18 }
  0x3a   :  { %268 = vrot.lane.b32.xlu2 %v262_v33, %s710_s18 }
  0x41   :  { %301 = vrot.lane.b32.xlu1 %v298_v39, %s711_s19  ;;  %299 = vrot.lane.b32.xlu0 %v296_v37, %s711_s19 }
  0x42   :  { %303 = vrot.lane.b32.xlu2 %v297_v38, %s711_s19 }
  0x64   :  { %v94_v41 = vpop.permute.xlu2 %93 }
  0x6c   :  { %v92_v42 = vpop.permute.xlu2 %91 }
  0x74   :  { %v129_v45 = vpop.permute.xlu2 %128 }
  0x7b   :  { %v59_v43 = vpop.permute.xlu1 %58  ;;  %v55_v44 = vpop.permute.xlu0 %54 }
  0x7c   :  { %68 = vst.msk [vmem:[#allocation2 + $0x20] sm:$0x1] %vm67_vm7, %v59_v43  ;;  %vm100_vm7 = vcmask 285848   ;;  %v164_v50 = vpop.permute.xlu2 %163 }
  0x7d   :  { %74 = vst.msk [vmem:[#allocation2 + $0x20] sm:$0x1] %vm73_vm8, %v712_v40  ;;  %vm106_vm8 = vcmask 302368  }
  0x7e   :  { %80 = vst.msk [vmem:[#allocation2 + $0x20] sm:$0x1] %vm79_vm9, %v712_v40  ;;  %vm112_vm9 = vcmask 441768  }
  0x7f   :  { %64 = vst.msk [vmem:[#allocation2] sm:$0xfe] %vm63_vm10, %v55_v44  ;;  %vm135_vm10 = vcmask 433448  }
  0x80   :  { %70 = vst.msk [vmem:[#allocation2] sm:$0xfe] %vm69_vm11, %v712_v40  ;;  %vm141_vm11 = vcmask 449968  }
  0x81   :  { %76 = vst.msk [vmem:[#allocation2] sm:$0xfe] %vm75_vm12, %v712_v40  ;;  %vm110_vm12 = vcmask 441769  }
  0x82   :  { %103 = vst.msk [vmem:[#allocation2 + $0x20] sm:$0x1] %vm102_vm13, %v94_v41  ;;  %vm133_vm13 = vcmask 433449  }
  0x83   :  { %v90_v46 = vpop.permute.xlu1 %89  ;;  %v57_v47 = vpop.permute.xlu0 %56  ;;  %109 = vst.msk [vmem:[#allocation2 + $0x20] sm:$0x1] %vm108_vm14, %v712_v40  ;;  %vm139_vm14 = vcmask 449969  }
  0x84   :  { %99 = vst.msk [vmem:[#allocation2] sm:$0xfe] %vm98_vm15, %v90_v46  ;;  %vm149_vm15 = vcmask 582200   ;;  %v199_v53 = vpop.permute.xlu2 %198 }
  0x85   :  { %105 = vst.msk [vmem:[#allocation2] sm:$0xfe] %vm104_vm0, %v712_v40  ;;  %vm172_vm0 = vcmask 573880  }
  0x86   :  { %66 = vst.msk [vmem:[#allocation2 + $0x10] sm:$0xff] %vm65_vm1, %v57_v47  ;;  %vm178_vm1 = vcmask 590400  }
  0x87   :  { %72 = vst.msk [vmem:[#allocation2 + $0x10] sm:$0xff] %vm71_vm2, %v712_v40  ;;  %vm147_vm2 = vcmask 589368  }
  0x88   :  { %78 = vst.msk [vmem:[#allocation2 + $0x10] sm:$0xff] %vm77_vm3, %v712_v40  ;;  %vm170_vm3 = vcmask 581048  }
  0x89   :  { %115 = vst.msk [vmem:[#allocation2 + $0x20] sm:$0x1] %vm114_vm4, %v712_v40  ;;  %vm176_vm4 = vcmask 597568  }
  0x8a   :  { %138 = vst.msk [vmem:[#allocation2 + $0x20] sm:$0x1] %vm137_vm5, %v129_v45  ;;  %vm145_vm5 = vcmask 589369  }
  0x8b   :  { %144 = vst.msk [vmem:[#allocation2 + $0x20] sm:$0x1] %vm143_vm6, %v712_v40  ;;  %v127_v48 = vpop.permute.xlu1 %126  ;;  %v125_v49 = vpop.permute.xlu0 %124  ;;  %vm168_vm6 = vcmask 581049  }
  0x8c   :  { %101 = vst.msk [vmem:[#allocation2 + $0x10] sm:$0xff] %vm100_vm7, %v92_v42  ;;  %vm174_vm7 = vcmask 597569   ;;  %v234_v56 = vpop.permute.xlu2 %233 }
  0x8d   :  { %107 = vst.msk [vmem:[#allocation2 + $0x10] sm:$0xff] %vm106_vm8, %v712_v40  ;;  %vm184_vm8 = vcmask 729800  }
  0x8e   :  { %113 = vst.msk [vmem:[#allocation2 + $0x10] sm:$0xff] %vm112_vm9, %v712_v40  ;;  %vm207_vm9 = vcmask 721480  }
  0x8f   :  { %136 = vst.msk [vmem:[#allocation2 + $0x10] sm:$0xff] %vm135_vm10, %v127_v48  ;;  %vm213_vm10 = vcmask 738000  }
  0x90   :  { %142 = vst.msk [vmem:[#allocation2 + $0x10] sm:$0xff] %vm141_vm11, %v712_v40  ;;  %vm182_vm11 = vcmask 736968  }
  0x91   :  { %111 = vst.msk [vmem:[#allocation2] sm:$0xfe] %vm110_vm12, %v712_v40  ;;  %vm205_vm12 = vcmask 728648  }
  0x92   :  { %134 = vst.msk [vmem:[#allocation2] sm:$0xfe] %vm133_vm13, %v125_v49  ;;  %vm211_vm13 = vcmask 745168  }
  0x93   :  { %140 = vst.msk [vmem:[#allocation2] sm:$0xfe] %vm139_vm14, %v712_v40  ;;  %v162_v51 = vpop.permute.xlu1 %161  ;;  %v160_v52 = vpop.permute.xlu0 %159  ;;  %vm180_vm14 = vcmask 736969  }
  0x94   :  { %150 = vst.msk [vmem:[#allocation2 + $0x20] sm:$0x1] %vm149_vm15, %v712_v40  ;;  %vm203_vm15 = vcmask 728649   ;;  %v269_v59 = vpop.permute.xlu2 %268 }
  0x95   :  { %173 = vst.msk [vmem:[#allocation2 + $0x20] sm:$0x1] %vm172_vm0, %v164_v50  ;;  %vm209_vm0 = vcmask 745169  }
  0x96   :  { %179 = vst.msk [vmem:[#allocation2 + $0x20] sm:$0x1] %vm178_vm1, %v712_v40  ;;  %vm219_vm1 = vcmask 877400  }
  0x97   :  { %148 = vst.msk [vmem:[#allocation2 + $0x10] sm:$0xff] %vm147_vm2, %v712_v40  ;;  %vm242_vm2 = vcmask 869080  }
  0x98   :  { %171 = vst.msk [vmem:[#allocation2 + $0x10] sm:$0xff] %vm170_vm3, %v162_v51  ;;  %vm248_vm3 = vcmask 885600  }
  0x99   :  { %177 = vst.msk [vmem:[#allocation2 + $0x10] sm:$0xff] %vm176_vm4, %v712_v40  ;;  %vm217_vm4 = vcmask 884568  }
  0x9a   :  { %146 = vst.msk [vmem:[#allocation2] sm:$0xfe] %vm145_vm5, %v712_v40  ;;  %vm240_vm5 = vcmask 876248  }
  0x9b   :  { %169 = vst.msk [vmem:[#allocation2] sm:$0xfe] %vm168_vm6, %v160_v52  ;;  %v197_v54 = vpop.permute.xlu1 %196  ;;  %v195_v55 = vpop.permute.xlu0 %194  ;;  %vm246_vm6 = vcmask 892768  }
  0x9c   :  { %175 = vst.msk [vmem:[#allocation2] sm:$0xfe] %vm174_vm7, %v712_v40  ;;  %vm215_vm7 = vcmask 884569   ;;  %v304_v62 = vpop.permute.xlu2 %303 }
  0x9d   :  { %185 = vst.msk [vmem:[#allocation2 + $0x20] sm:$0x1] %vm184_vm8, %v712_v40  ;;  %vm238_vm8 = vcmask 876249  }
  0x9e   :  { %208 = vst.msk [vmem:[#allocation2 + $0x20] sm:$0x1] %vm207_vm9, %v199_v53  ;;  %vm244_vm9 = vcmask 892769  }
  0x9f   :  { %214 = vst.msk [vmem:[#allocation2 + $0x20] sm:$0x1] %vm213_vm10, %v712_v40  ;;  %vm254_vm10 = vcmask 1025000  }
  0xa0   :  { %183 = vst.msk [vmem:[#allocation2 + $0x10] sm:$0xff] %vm182_vm11, %v712_v40  ;;  %vm277_vm11 = vcmask 1016680  }
  0xa1   :  { %206 = vst.msk [vmem:[#allocation2 + $0x10] sm:$0xff] %vm205_vm12, %v197_v54  ;;  %vm252_vm12 = vcmask 1032168  }
  0xa2   :  { %212 = vst.msk [vmem:[#allocation2 + $0x10] sm:$0xff] %vm211_vm13, %v712_v40  ;;  %vm275_vm13 = vcmask 1023848  }
  0xa3   :  { %181 = vst.msk [vmem:[#allocation2] sm:$0xfe] %vm180_vm14, %v712_v40  ;;  %v232_v57 = vpop.permute.xlu1 %231  ;;  %v230_v58 = vpop.permute.xlu0 %229  ;;  %vm250_vm14 = vcmask 1032169  }
  0xa4   :  { %204 = vst.msk [vmem:[#allocation2] sm:$0xfe] %vm203_vm15, %v195_v55  ;;  %vm273_vm15 = vcmask 1023849  }
  0xa5   :  { %210 = vst.msk [vmem:[#allocation2] sm:$0xfe] %vm209_vm0, %v712_v40  ;;  %vm289_vm0 = vcmask 123000  }
  0xa6   :  { %220 = vst.msk [vmem:[#allocation2 + $0x20] sm:$0x1] %vm219_vm1, %v712_v40  ;;  %vm283_vm1 = vcmask 1033200  }
  0xa7   :  { %243 = vst.msk [vmem:[#allocation2 + $0x20] sm:$0x1] %vm242_vm2, %v234_v56  ;;  %vm316_vm2 = vcmask 1041400  }
  0xa8   :  { %249 = vst.msk [vmem:[#allocation2 + $0x20] sm:$0x1] %vm248_vm3, %v712_v40  ;;  %vm318_vm3 = vcmask 114688  }
  0xa9   :  { %218 = vst.msk [vmem:[#allocation2 + $0x10] sm:$0xff] %vm217_vm4, %v712_v40  ;;  %vm287_vm4 = vcmask 130168  }
  0xaa   :  { %241 = vst.msk [vmem:[#allocation2 + $0x10] sm:$0xff] %vm240_vm5, %v232_v57  ;;  %vm281_vm5 = vcmask 1040368  }
  0xab   :  { %247 = vst.msk [vmem:[#allocation2 + $0x10] sm:$0xff] %vm246_vm6, %v712_v40  ;;  %v267_v60 = vpop.permute.xlu1 %266  ;;  %v265_v61 = vpop.permute.xlu0 %264  ;;  %vm312_vm6 = vcmask 1048568  }
  0xac   :  { %216 = vst.msk [vmem:[#allocation2] sm:$0xfe] %vm215_vm7, %v712_v40  ;;  %vm314_vm7 = vcmask 121856  }
  0xad   :  { %239 = vst.msk [vmem:[#allocation2] sm:$0xfe] %vm238_vm8, %v230_v58  ;;  %vm285_vm8 = vcmask 130169  }
  0xae   :  { %245 = vst.msk [vmem:[#allocation2] sm:$0xfe] %vm244_vm9, %v712_v40  ;;  %vm279_vm9 = vcmask 1040369  }
  0xaf   :  { %255 = vst.msk [vmem:[#allocation2 + $0x20] sm:$0x1] %vm254_vm10, %v712_v40  ;;  %vm308_vm10 = vcmask 1048569  }
  0xb0   :  { %278 = vst.msk [vmem:[#allocation2 + $0x20] sm:$0x1] %vm277_vm11, %v269_v59  ;;  %vm310_vm11 = vcmask 121857  }
  0xb1   :  { %253 = vst.msk [vmem:[#allocation2 + $0x10] sm:$0xff] %vm252_vm12, %v712_v40  ;;  %vm27_vm12 = vcmp.lt.s32.totalorder %v25_v0, 144 }
  0xb2   :  { %276 = vst.msk [vmem:[#allocation2 + $0x10] sm:$0xff] %vm275_vm13, %v267_v60  ;;  %vm332_vm13 = vcmask 1046528  }
  0xb3   :  { %251 = vst.msk [vmem:[#allocation2] sm:$0xfe] %vm250_vm14, %v712_v40  ;;  %v302_v63 = vpop.permute.xlu1 %301  ;;  %v300_v1 = vpop.permute.xlu0 %299  ;;  %vm355_vm14 = vcmask 1045504  }
  0xb4   :  { %274 = vst.msk [vmem:[#allocation2] sm:$0xfe] %vm273_vm15, %v265_v61  ;;  %vm398_vm15 = vcmask 1039360  }
  0xb5   :  { %290 = vst.msk [vmem:[#allocation2 + $0x28] sm:$0x1] %vm289_vm0, %v712_v40  ;;  %vm417_vm0 = vcmask 1031168  }
  0xb6   :  { %284 = vst.msk [vmem:[#allocation2 + $0x20] sm:$0x1] %vm283_vm1, %v712_v40  ;;  %vm532_vm1 = vcmask 130048  }
  0xb7   :  { %317 = vst.msk [vmem:[#allocation2 + $0x20] sm:$0x1] %vm316_vm2, %v304_v62  ;;  %vm601_vm2 = vcmask 15360  }
  0xb8   :  { %319 = vst.msk [vmem:[#allocation2 + $0x28] sm:$0x1] %vm318_vm3, %v304_v62 }
  0xb9   :  { %288 = vst.msk [vmem:[#allocation2 + $0x18] sm:$0xff] %vm287_vm4, %v712_v40 }
  0xba   :  { %282 = vst.msk [vmem:[#allocation2 + $0x10] sm:$0xff] %vm281_vm5, %v712_v40 }
  0xbb   :  { %313 = vst.msk [vmem:[#allocation2 + $0x10] sm:$0xff] %vm312_vm6, %v302_v63 }
  0xbc   :  { %315 = vst.msk [vmem:[#allocation2 + $0x18] sm:$0xff] %vm314_vm7, %v302_v63 }
  0xbd   :  { %286 = vst.msk [vmem:[#allocation2 + $0x8] sm:$0xfe] %vm285_vm8, %v712_v40 }
  0xbe   :  { %280 = vst.msk [vmem:[#allocation2] sm:$0xfe] %vm279_vm9, %v712_v40 }
  0xbf   :  { %309 = vst.msk [vmem:[#allocation2] sm:$0xfe] %vm308_vm10, %v300_v1 }
  0xc0   :  { %311 = vst.msk [vmem:[#allocation2 + $0x8] sm:$0xfe] %vm310_vm11, %v300_v1 }
  0xc1   :  { %32 = vst.msk [vmem:[#allocation2 + $0x21] ss:$8 sm:$0x3] %vm27_vm12, %v712_v40 }
  0xc2   :  { %29 = vst.msk [vmem:[#allocation2] ss:$8 sm:$0x3] %vm27_vm12, %v712_v40  ;;  %v322_v23 = vld [vmem:[#allocation2 + $0x10] sm:$0xff] }
  0xc3   :  { %v323_v2 = vld [vmem:[#allocation2 + $0x18] sm:$0xff]  ;;  %v334_v26 = vrot.slane %v322_v23, 1  ;;  %v357_v33 = vrot.slane %v322_v23, 2 }
  0xc4   :  { %v337_v3 = vrot.slane %v323_v2, 1  ;;  %v360_v6 = vrot.slane %v323_v2, 2 }
  0xc8   :  { %v325_v4 = vld [vmem:[#allocation2 + $0x28] sm:$0x3]  ;;  %v324_v24 = vld [vmem:[#allocation2 + $0x20] sm:$0x3] }
  0xc9   :  { %v341_v5 = vrot.slane %v325_v4, 1  ;;  %v364_v7 = vrot.slane %v325_v4, 2  ;;  %v321_v8 = vld [vmem:[#allocation2 + $0x8] sm:$0xff]  ;;  %v339_v27 = vrot.slane %v324_v24, 1  ;;  %v320_v29 = vld [vmem:[#allocation2] sm:$0xff]  ;;  %v362_v34 = vrot.slane %v324_v24, 2 }
  0xca   :  { %v336_v9 = vrot.slane %v321_v8, 1  ;;  %v359_v10 = vrot.slane %v321_v8, 2  ;;  %v333_v32 = vrot.slane %v320_v29, 1  ;;  %v356_v39 = vrot.slane %v320_v29, 2 }
  0xcb   :  { %v342_v11 = vsel %vm332_vm13, %v337_v3, %v341_v5  ;;  %v365_v14 = vsel %vm355_vm14, %v360_v6, %v364_v7  ;;  %v340_v31 = vsel %vm332_vm13, %v334_v26, %v339_v27  ;;  %v363_v38 = vsel %vm355_vm14, %v357_v33, %v362_v34 }
  0xcc   :  { %v354_v12 = vmax.f32 %v323_v2, %v342_v11  ;;  %v338_v13 = vsel %vm332_vm13, %v336_v9, %v337_v3  ;;  %v361_v17 = vsel %vm355_vm14, %v359_v10, %v360_v6  ;;  %v350_v18 = vmin.f32 %v323_v2, %v342_v11 }
  0xcd   :  { %v352_v15 = vmax.f32 %v321_v8, %v338_v13  ;;  %v348_v25 = vmin.f32 %v321_v8, %v338_v13  ;;  %v353_v35 = vmax.f32 %v322_v23, %v340_v31  ;;  %v335_v36 = vsel %vm332_vm13, %v333_v32, %v334_v26 }
  0xce   :  { %v802_v16 = vmax.f32 %v354_v12, %v365_v14  ;;  %v373_v19 = vmin.f32 %v354_v12, %v365_v14  ;;  %v351_v41 = vmax.f32 %v320_v29, %v335_v36  ;;  %v358_v42 = vsel %vm355_vm14, %v356_v39, %v357_v33 }
  0xcf   :  { %v805_v20 = vmax.f32 %v352_v15, %v361_v17  ;;  %v371_v22 = vmin.f32 %v352_v15, %v361_v17  ;;  %v832_v40 = vmax.f32 %v353_v35, %v363_v38  ;;  %v347_v44 = vmin.f32 %v320_v29, %v335_v36 }
  0xd0   :  { %438 = vrot.lane.b32.xlu1 %v802_v16, %s711_s19  ;;  %v809_v21 = vmin.f32 %v350_v18, %v373_v19  ;;  %v819_v30 = vmax.f32 %v350_v18, %v373_v19  ;;  %v370_v43 = vmin.f32 %v351_v41, %v358_v42  ;;  %v839_v45 = vmax.f32 %v351_v41, %v358_v42 }
  0xd1   :  { %434 = vrot.lane.b32.xlu2 %v805_v20, %s711_s19  ;;  %v815_v28 = vmin.f32 %v348_v25, %v371_v22  ;;  %v827_v37 = vmax.f32 %v348_v25, %v371_v22  ;;  %v372_v47 = vmin.f32 %v353_v35, %v363_v38  ;;  %v349_v48 = vmin.f32 %v322_v23, %v340_v31 }
  0xd2   :  { %396 = vrot.lane.b32.xlu0 %v809_v21, %s711_s19  ;;  %v843_v46 = vmin.f32 %v347_v44, %v370_v43  ;;  %v859_v50 = vmax.f32 %v347_v44, %v370_v43 }
  0xd3   :  { %v851_v49 = vmin.f32 %v349_v48, %v372_v47  ;;  %v865_v51 = vmax.f32 %v349_v48, %v372_v47 }
  0xd8   :  { %392 = vrot.lane.b32.xlu1 %v815_v28, %s711_s19 }
  0xd9   :  { %411 = vrot.lane.b32.xlu2 %v815_v28, %s713_s20 }
  0xda   :  { %478 = vrot.lane.b32.xlu0 %v819_v30, %s711_s19 }
  0xe0   :  { %415 = vrot.lane.b32.xlu1 %v809_v21, %s713_s20 }
  0xe1   :  { %496 = vrot.lane.b32.xlu2 %v827_v37, %s713_s20 }
  0xe2   :  { %436 = vrot.lane.b32.xlu0 %v832_v40, %s711_s19 }
  0xe8   :  { %474 = vrot.lane.b32.xlu1 %v827_v37, %s711_s19 }
  0xe9   :  { %432 = vrot.lane.b32.xlu2 %v839_v45, %s711_s19 }
  0xea   :  { %390 = vrot.lane.b32.xlu0 %v843_v46, %s711_s19 }
  0xf0   :  { %500 = vrot.lane.b32.xlu1 %v819_v30, %s713_s20 }
  0xf1   :  { %450 = vrot.lane.b32.xlu2 %v839_v45, %s713_s20 }
  0xf2   :  { %413 = vrot.lane.b32.xlu0 %v851_v49, %s713_s20 }
  0xf8   :  { %409 = vrot.lane.b32.xlu1 %v843_v46, %s713_s20 }
  0xf9   :  { %394 = vrot.lane.b32.xlu2 %v851_v49, %s711_s19 }
  0xfa   :  { %472 = vrot.lane.b32.xlu0 %v859_v50, %s711_s19 }
 0x100   :  { %494 = vrot.lane.b32.xlu1 %v859_v50, %s713_s20 }
 0x101   :  { %476 = vrot.lane.b32.xlu2 %v865_v51, %s711_s19 }
 0x102   :  { %498 = vrot.lane.b32.xlu0 %v865_v51, %s713_s20 }
 0x108   :  { %454 = vrot.lane.b32.xlu1 %v832_v40, %s713_s20 }
 0x109   :  { %456 = vrot.lane.b32.xlu2 %v802_v16, %s713_s20 }
 0x10a   :  { %452 = vrot.lane.b32.xlu0 %v805_v20, %s713_s20 }
 0x12b   :  { %v879_v52 = vpop.permute.xlu2 %434 }
 0x133   :  { %v881_v53 = vpop.permute.xlu2 %411 }
 0x13b   :  { %v497_v54 = vpop.permute.xlu2 %496 }
 0x142   :  { %v439_v55 = vpop.permute.xlu1 %438 }
 0x143   :  { %v433_v56 = vpop.permute.xlu2 %432  ;;  %v449_v10 = vmin.f32 %v802_v16, %v439_v55 }
 0x144   :  { %v397_v57 = vpop.permute.xlu0 %396 }
 0x145   :  { %v408_v5 = vmax.f32 %v809_v21, %v397_v57 }
 0x14a   :  { %v393_v58 = vpop.permute.xlu1 %392 }
 0x14b   :  { %v883_v59 = vpop.permute.xlu2 %450  ;;  %v406_v33 = vmax.f32 %v815_v28, %v393_v58  ;;  %v440_v28 = vsel %vm398_vm15, %v433_v56, %v879_v52 }
 0x14c   :  { %v479_v60 = vpop.permute.xlu0 %478  ;;  %v446_v56 = vmin.f32 %v839_v45, %v440_v28 }
 0x14d   :  { %v493_v3 = vmax.f32 %v819_v30, %v479_v60  ;;  %v489_v6 = vmin.f32 %v819_v30, %v479_v60 }
 0x152   :  { %v416_v61 = vpop.permute.xlu1 %415 }
 0x153   :  { %v395_v62 = vpop.permute.xlu2 %394  ;;  %v427_v11 = vmax.f32 %v408_v5, %v416_v61 }
 0x154   :  { %v437_v63 = vpop.permute.xlu0 %436  ;;  %v400_v30 = vsel %vm398_vm15, %v395_v62, %v397_v57 }
 0x155   :  { %v441_v38 = vsel %vm398_vm15, %v437_v63, %v439_v55  ;;  %v407_v43 = vmax.f32 %v851_v49, %v400_v30  ;;  %v447_v49 = vmin.f32 %v805_v20, %v879_v52 }
 0x15a   :  { %v475_v0 = vpop.permute.xlu1 %474 }
 0x15b   :  { %v477_v1 = vpop.permute.xlu2 %476  ;;  %v491_v21 = vmax.f32 %v827_v37, %v475_v0  ;;  %v487_v39 = vmin.f32 %v827_v37, %v475_v0 }
 0x15c   :  { %v391_v2 = vpop.permute.xlu0 %390  ;;  %v481_v23 = vsel %vm398_vm15, %v477_v1, %v479_v60 }
 0x15d   :  { %v492_v26 = vmax.f32 %v865_v51, %v481_v23  ;;  %v509_v31 = vmin.f32 %v491_v21, %v497_v54  ;;  %v488_v34 = vmin.f32 %v865_v51, %v481_v23  ;;  %v399_v41 = vsel %vm398_vm15, %v391_v2, %v393_v58 }
 0x15e   :  { %v405_v37 = vmax.f32 %v843_v46, %v399_v41 }
 0x15f   :  { %v513_v48 = vmax.f32 %v487_v39, %v509_v31 }
 0x162   :  { %v501_v4 = vpop.permute.xlu1 %500 }
 0x163   :  { %v511_v7 = vmin.f32 %v493_v3, %v501_v4  ;;  %v457_v8 = vpop.permute.xlu2 %456 }
 0x164   :  { %v414_v9 = vpop.permute.xlu0 %413  ;;  %v467_v14 = vmin.f32 %v449_v10, %v457_v8 }
 0x165   :  { %v515_v12 = vmax.f32 %v489_v6, %v511_v7  ;;  %v419_v42 = vsel %vm417_vm0, %v414_v9, %v416_v61 }
 0x166   :  { %v426_v55 = vmax.f32 %v407_v43, %v419_v42 }
 0x167   :  { %v523_v13 = vmax.f32 %v427_v11, %v515_v12  ;;  %v519_v15 = vmin.f32 %v427_v11, %v515_v12 }
 0x169   :  { %v527_v17 = vmin.f32 %v523_v13, %v467_v14 }
 0x16a   :  { %v410_v18 = vpop.permute.xlu1 %409 }
 0x16b   :  { %v531_v19 = vmax.f32 %v519_v15, %v527_v17  ;;  %v418_v51 = vsel %vm417_vm0, %v410_v18, %v881_v53 }
 0x16c   :  { %v473_v22 = vpop.permute.xlu0 %472  ;;  %v424_v61 = vmax.f32 %v405_v37, %v418_v51 }
 0x16d   :  { %599 = vrot.lane.b32.xlu0 %v531_v19, %s714_s21  ;;  %v480_v24 = vsel %vm398_vm15, %v473_v22, %v475_v0 }
 0x16e   :  { %v490_v27 = vmax.f32 %v859_v50, %v480_v24  ;;  %v486_v44 = vmin.f32 %v859_v50, %v480_v24  ;;  %v425_v50 = vmax.f32 %v406_v33, %v881_v53 }
 0x170   :  { %v521_v1 = vmax.f32 %v425_v50, %v513_v48  ;;  %v517_v52 = vmin.f32 %v425_v50, %v513_v48 }
 0x172   :  { %v495_v16 = vpop.permute.xlu1 %494 }
 0x173   :  { %v502_v25 = vsel %vm417_vm0, %v495_v16, %v497_v54  ;;  %v448_v54 = vmin.f32 %v832_v40, %v441_v38 }
 0x174   :  { %v499_v29 = vpop.permute.xlu0 %498  ;;  %v508_v35 = vmin.f32 %v490_v27, %v502_v25 }
 0x175   :  { %v503_v32 = vsel %vm417_vm0, %v499_v29, %v501_v4 }
 0x176   :  { %v510_v36 = vmin.f32 %v492_v26, %v503_v32  ;;  %v512_v57 = vmax.f32 %v486_v44, %v508_v35 }
 0x178   :  { %v514_v47 = vmax.f32 %v488_v34, %v510_v36  ;;  %v520_v4 = vmax.f32 %v424_v61, %v512_v57  ;;  %v516_v53 = vmin.f32 %v424_v61, %v512_v57 }
 0x17a   :  { %v455_v58 = vpop.permute.xlu1 %454  ;;  %v522_v63 = vmax.f32 %v426_v55, %v514_v47  ;;  %v518_v2 = vmin.f32 %v426_v55, %v514_v47 }
 0x17b   :  { %v459_v60 = vsel %vm417_vm0, %v455_v58, %v457_v8 }
 0x17c   :  { %v466_v62 = vmin.f32 %v448_v54, %v459_v60  ;;  %v453_v0 = vpop.permute.xlu0 %452 }
 0x17d   :  { %v458_v40 = vsel %vm417_vm0, %v883_v59, %v453_v0  ;;  %v465_v46 = vmin.f32 %v447_v49, %v453_v0 }
 0x17e   :  { %v526_v3 = vmin.f32 %v522_v63, %v466_v62  ;;  %v464_v5 = vmin.f32 %v446_v56, %v458_v40 }
 0x17f   :  { %v525_v20 = vmin.f32 %v521_v1, %v465_v46 }
 0x180   :  { %v530_v6 = vmax.f32 %v518_v2, %v526_v3  ;;  %v524_v7 = vmin.f32 %v520_v4, %v464_v5 }
 0x181   :  { %v529_v45 = vmax.f32 %v517_v52, %v525_v20 }
 0x182   :  { %534 = vst.msk [vmem:[#allocation6 + $0x8] sm:$0xff] %vm532_vm1, %v530_v6  ;;  %v528_v8 = vmax.f32 %v516_v53, %v524_v7 }
 0x183   :  { %595 = vrot.lane.b32.xlu1 %v529_v45, %s714_s21 }
 0x184   :  { %533 = vst.msk [vmem:[#allocation6] sm:$0xff] %vm532_vm1, %v528_v8  ;;  %546 = vrot.lane.b32.xlu2 %v528_v8, %s715_s22  ;;  %537 = vrot.lane.b32.xlu0 %v528_v8, %s716_s23 }
 0x18b   :  { %539 = vrot.lane.b32.xlu1 %v530_v6, %s716_s23 }
 0x18c   :  { %597 = vrot.lane.b32.xlu2 %v530_v6, %s714_s21  ;;  %593 = vrot.lane.b32.xlu0 %v528_v8, %s714_s21 }
 0x193   :  { %548 = vrot.lane.b32.xlu1 %v530_v6, %s715_s22 }
 0x194   :  { %555 = vrot.lane.b32.xlu2 %v528_v8, %s717_s24  ;;  %557 = vrot.lane.b32.xlu0 %v530_v6, %s717_s24 }
 0x19b   :  { %564 = vrot.lane.b32.xlu1 %v528_v8, %s718_s25 }
 0x19c   :  { %566 = vrot.lane.b32.xlu2 %v530_v6, %s718_s25  ;;  %573 = vrot.lane.b32.xlu0 %v528_v8, %s719_s26 }
 0x1a3   :  { %575 = vrot.lane.b32.xlu1 %v530_v6, %s719_s26 }
 0x1a4   :  { %582 = vrot.lane.b32.xlu2 %v528_v8, %s720_s27  ;;  %584 = vrot.lane.b32.xlu0 %v530_v6, %s720_s27 }
 0x1de   :  { %v547_v59 = vpop.permute.xlu2 %546 }
 0x1df   :  { %553 = vst.msk [vmem:[#allocation6 + $0x20] sm:$0xff] %vm532_vm1, %v547_v59  ;;  %v600_v9 = vpop.permute.xlu0 %599 }
 0x1e6   :  { %v598_v10 = vpop.permute.xlu2 %597 }
 0x1e7   :  { %v603_v11 = vsel %vm601_vm2, %v598_v10, %v600_v9 }
 0x1e8   :  { %608 = vst.msk [vmem:[#allocation6 + $0x78] sm:$0xff] %vm532_vm1, %v603_v11 }
 0x1ee   :  { %v556_v12 = vpop.permute.xlu2 %555 }
 0x1ef   :  { %562 = vst.msk [vmem:[#allocation6 + $0x30] sm:$0xff] %vm532_vm1, %v556_v12 }
 0x1f5   :  { %v596_v13 = vpop.permute.xlu1 %595 }
 0x1f6   :  { %v567_v14 = vpop.permute.xlu2 %566  ;;  %v538_v15 = vpop.permute.xlu0 %537 }
 0x1f7   :  { %572 = vst.msk [vmem:[#allocation6 + $0x48] sm:$0xff] %vm532_vm1, %v567_v14 }
 0x1f8   :  { %544 = vst.msk [vmem:[#allocation6 + $0x10] sm:$0xff] %vm532_vm1, %v538_v15 }
 0x1fd   :  { %v540_v17 = vpop.permute.xlu1 %539 }
 0x1fe   :  { %545 = vst.msk [vmem:[#allocation6 + $0x18] sm:$0xff] %vm532_vm1, %v540_v17  ;;  %v583_v18 = vpop.permute.xlu2 %582  ;;  %v594_v19 = vpop.permute.xlu0 %593 }
 0x1ff   :  { %589 = vst.msk [vmem:[#allocation6 + $0x60] sm:$0xff] %vm532_vm1, %v583_v18  ;;  %v602_v22 = vsel %vm601_vm2, %v594_v19, %v596_v13 }
 0x200   :  { %607 = vst.msk [vmem:[#allocation6 + $0x70] sm:$0xff] %vm532_vm1, %v602_v22 }
 0x205   :  { %v549_v21 = vpop.permute.xlu1 %548 }
 0x206   :  { %554 = vst.msk [vmem:[#allocation6 + $0x28] sm:$0xff] %vm532_vm1, %v549_v21  ;;  %v558_v23 = vpop.permute.xlu0 %557 }
 0x207   :  { %563 = vst.msk [vmem:[#allocation6 + $0x38] sm:$0xff] %vm532_vm1, %v558_v23 }
 0x20d   :  { %v565_v24 = vpop.permute.xlu1 %564 }
 0x20e   :  { %571 = vst.msk [vmem:[#allocation6 + $0x40] sm:$0xff] %vm532_vm1, %v565_v24  ;;  %v574_v16 = vpop.permute.xlu0 %573 }
 0x20f   :  { %580 = vst.msk [vmem:[#allocation6 + $0x50] sm:$0xff] %vm532_vm1, %v574_v16 }
 0x215   :  { %v576_v25 = vpop.permute.xlu1 %575 }
 0x216   :  { %581 = vst.msk [vmem:[#allocation6 + $0x58] sm:$0xff] %vm532_vm1, %v576_v25  ;;  %v585_v26 = vpop.permute.xlu0 %584 }
 0x217   :  { %590 = vst.msk [vmem:[#allocation6 + $0x68] sm:$0xff] %vm532_vm1, %v585_v26 }
 0x218   :  { %621 = dma.vmem_to_hbm [thread:$0]  %s614_s29, 2048, %s616_s3, [#allocation5], %s702_s11, %s702_s11, %s703_s12  }
 0x219   :  { %699 = dma.done.wait [#allocation5], 2048  }
 0x21a   :  { %700 = vsyncadd [#allocation5], 4294965248 }
 0x21b   :  { %626 = vsyncpa [#allocation4], 1 }
 0x21c   :  { %627 = vsyncpa [#allocation5], 1 }

</bundles_post_ra>
